<compile_context>
chip_gen: v5e
topology: v5e:2x2
jax: 0.10.0
libtpu: 0.0.40
codegen_flags: <defaults>
</compile_context>

<pallas_src>
import math
import functools

import jax
import jax.numpy as jnp
import numpy as np
from jax.experimental import pallas as pl
from jax.experimental.pallas import tpu as pltpu


def _vmem():
    return pl.BlockSpec(memory_space=pltpu.MemorySpace.VMEM)


def _smem():
    return pl.BlockSpec(memory_space=pltpu.MemorySpace.SMEM)


def build_pick_prob_table(subset, n):
    """table[t*(n+1)+c, 0, :] == pick_probabilities(subset, t, n, c)."""
    tab = np.zeros((subset, n + 1, n), dtype=np.float32)
    for t in range(subset):
        rp = subset - t
        for c in range(n + 1):
            no = 1.0
            for i in range(c, n - rp + 1):
                s = rp / float(n - i)
                tab[t, c, i] = s * no
                no *= (1.0 - s)
    return tab.reshape(subset * (n + 1), 1, n)


def make_srnn_forward(n, input_dim, hidden_dim, subset):
    H = hidden_dim
    G = 4 * H
    ptab = jnp.asarray(build_pick_prob_table(subset, n))

    def kernel(emb_ref, embT_ref, wih_ref, whh_ref, b_ref, ptab_ref,
               h0_ref, c0_ref,
               outputs_ref, h_ref, c_ref, loss_ref, picks_ref,
               xw_ref, st_ref):

        def scores_from(hvec, row):
            # similarity over the feature dim, lane-dense (1, n).  The softmax
            # normalizer cancels in the final normalization, so one approx
            # reciprocal (EUP) is enough; relative order (argmax) is exact.
            sim = jnp.dot(hvec, embT_ref[...], preferred_element_type=jnp.float32)
            e = jnp.exp(sim - jnp.max(sim, axis=-1, keepdims=True))
            w = e * ptab_ref[row]
            return w * pl.reciprocal(jnp.sum(w, axis=-1, keepdims=True), approx=True)

        def argmax_lanes(s):
            # first index of the max over the n lanes (== np.argmax), + value.
            mx = jnp.max(s, axis=-1, keepdims=True)                       # (1, 1)
            lane = jax.lax.broadcasted_iota(jnp.int32, s.shape, 1).astype(jnp.float32)
            idx = jnp.min(jnp.where(s == mx, lane, jnp.float32(n)))
            return idx.astype(jnp.int32), mx

        # ---- setup: state + weights resident in VMEM for the whole sequence
        h_ref[...] = h0_ref[...]
        c_ref[...] = c0_ref[...]

        # Batched input projection (x_i @ W_ih^T + b) for every timestep with a
        # single MXU matmul; the recurrent loop then needs only one MXU push
        # (h @ W_hh^T) on its serial critical path.
        proj = (jnp.dot(emb_ref[...], wih_ref[...],
                        preferred_element_type=jnp.float32) + b_ref[...])  # (n, 4H)
        for r in range(n):
            xw_ref[r] = proj[r:r + 1, :]

        for t in range(subset):
            picks_ref[t] = jnp.int32(0)

        # ---- initial pick: scores(embeds, numberspicked=0, current=0) ------
        s0 = scores_from(h_ref[...], 0)
        choice0, mx0 = argmax_lanes(s0)
        picks_ref[0] = choice0
        st_ref[0] = choice0            # last pick so far
        st_ref[1] = jnp.int32(1)       # number of picks so far
        loss_ref[...] = -jnp.log(mx0) / jnp.float32(n)

        # ---- sequential recurrence, fully on device -------------------------
        def step(i, carry):
            outputs_ref[i] = h_ref[...]            # output *before* step i

            @pl.when(st_ref[0] <= i)               # ref: "if picks[-1] > i: continue"
            def _():
                h_prev = h_ref[...]
                c_prev = c_ref[...]
                gates = xw_ref[i] + jnp.dot(h_prev, whh_ref[...],
                                            preferred_element_type=jnp.float32)
                i_g = jax.nn.sigmoid(gates[:, 0 * H:1 * H])
                f_g = jax.nn.sigmoid(gates[:, 1 * H:2 * H])
                g_g = jnp.tanh(gates[:, 2 * H:3 * H])
                o_g = jax.nn.sigmoid(gates[:, 3 * H:4 * H])
                c_new = f_g * c_prev + i_g * g_g
                h_new = o_g * jnp.tanh(c_new)
                c_ref[...] = c_new
                h_ref[...] = h_new

                npk = st_ref[1]

                @pl.when(npk < subset)
                def _():
                    row = npk * (n + 1) + (i + 1)
                    s = scores_from(h_new, row)
                    choice, mx = argmax_lanes(s)
                    picks_ref[npk] = choice
                    st_ref[0] = choice
                    st_ref[1] = npk + 1
                    denom = jnp.float32(n) - i.astype(jnp.float32)
                    loss_ref[...] = loss_ref[...] - jnp.log(mx) / denom

            return carry

        jax.lax.fori_loop(0, n, step, 0)

    call = pl.pallas_call(
        kernel,
        out_shape=(
            jax.ShapeDtypeStruct((n, 1, H), jnp.float32),   # outputs[i] (pre-step)
            jax.ShapeDtypeStruct((1, H), jnp.float32),      # final h (== final output)
            jax.ShapeDtypeStruct((1, H), jnp.float32),      # final c
            jax.ShapeDtypeStruct((1, 1), jnp.float32),      # loss
            jax.ShapeDtypeStruct((subset,), jnp.int32),     # picks
        ),
        in_specs=[_vmem()] * 8,
        out_specs=(_vmem(), _vmem(), _vmem(), _vmem(), _smem()),
        scratch_shapes=[
            pltpu.VMEM((n, 1, G), jnp.float32),   # per-step x @ W_ih^T + b
            pltpu.SMEM((2,), jnp.int32),          # [last pick, number of picks]
        ],
    )

    def fwd(embeds, wih_t, whh_t, b, h0, c0):
        embT = jnp.transpose(embeds)   # (D, n): similarity lands lane-dense (1, n)
        return call(embeds, embT, wih_t, whh_t, b, ptab, h0, c0)

    return jax.jit(fwd)


class SRNNPallas:
    """Pallas/JAX re-implementation of the SRNN forward pass (one fused kernel).

    input_fun / output_fun are identity; similarity is the default
    (x * y).sum over the feature dim; choice is argmax (tensormax).
    Requires input_dim == hidden_dim (as the default similarity does) and
    sequence length n >= subset.
    """

    def __init__(self, input_dim, hidden_dim, subset=10, seed=0):
        assert input_dim == hidden_dim, "default similarity needs input_dim == hidden_dim"
        self.input_dim = input_dim
        self.hidden_dim = hidden_dim
        self.subset = subset

        # Deterministic parameter init (PyTorch LSTM-style uniform(-1/sqrt(H), 1/sqrt(H))).
        key = jax.random.PRNGKey(seed)
        k1, k2, k3, k4 = jax.random.split(key, 4)
        bound = 1.0 / math.sqrt(hidden_dim)
        u = functools.partial(jax.random.uniform, minval=-bound, maxval=bound,
                              dtype=jnp.float32)
        W_ih = u(k1, (4 * hidden_dim, input_dim))   # (4H, D), gate order i,f,g,o
        W_hh = u(k2, (4 * hidden_dim, hidden_dim))  # (4H, H)
        b_ih = u(k3, (4 * hidden_dim,))
        b_hh = u(k4, (4 * hidden_dim,))
        self.W_ih_T = jnp.transpose(W_ih)                       # (D, 4H)
        self.W_hh_T = jnp.transpose(W_hh)                       # (H, 4H)
        self.b = (b_ih + b_hh).reshape(1, 4 * hidden_dim)       # (1, 4H)

        self.hidden = (jnp.zeros((1, hidden_dim), jnp.float32),
                       jnp.zeros((1, hidden_dim), jnp.float32))
        self.output = jnp.zeros((1, hidden_dim), jnp.float32)   # init_output

        self._fwd = {}   # one fused compiled forward per sequence length

    def forward(self, inputs):
        n = inputs.shape[0]
        assert n >= self.subset, "need at least `subset` timesteps"
        if n not in self._fwd:
            self._fwd[n] = make_srnn_forward(n, self.input_dim, self.hidden_dim,
                                             self.subset)
        h0, c0 = self.hidden
        outs, h_f, c_f, loss, picks = self._fwd[n](
            inputs, self.W_ih_T, self.W_hh_T, self.b, h0, c0)
        self.hidden = (h_f, c_f)
        self.output = h_f                                       # output_fun = identity
        outputs = [outs[i] for i in range(n)]                   # list of (1, H)
        picks_list = [int(p) for p in np.asarray(picks)]        # single D2H copy
        return loss[0, 0], outputs, picks_list


def reference_forward(inputs, W_ih_T, W_hh_T, b, subset):
    """Pure-numpy (float64) port of the PyTorch SRNN forward (identity funs)."""
    x = np.asarray(inputs, dtype=np.float64)       # (n, D)
    Wih = np.asarray(W_ih_T, dtype=np.float64)     # (D, 4H)
    Whh = np.asarray(W_hh_T, dtype=np.float64)     # (H, 4H)
    bias = np.asarray(b, dtype=np.float64)[0]      # (4H,)
    n = x.shape[0]
    H = Whh.shape[0]

    def pick_probabilities(k, numberspicked, current):
        prob = np.zeros(n)
        no = 1.0
        rp = k - numberspicked
        for i in range(current, n - rp + 1):
            s = rp / float(n - i)
            prob[i] = s * no
            no *= (1.0 - s)
        return prob

    def scores(out, numberspicked, current):
        sim = (x * out).sum(axis=1)
        e = np.exp(sim - sim.max())
        sm = e / e.sum()
        s = sm * pick_probabilities(subset, numberspicked, current)
        return s / s.sum()

    def sigmoid(v):
        return 1.0 / (1.0 + np.exp(-v))

    h = np.zeros(H)
    c = np.zeros(H)
    out = np.zeros(H)
    s = scores(out, 0, 0)
    choice = int(np.argmax(s))
    picks = [choice]
    loss = -np.log(s[choice]) / n
    outputs = []
    for i in range(n):
        outputs.append(out.copy())
        if picks[-1] > i:
            continue
        g = x[i] @ Wih + h @ Whh + bias
        i_g = sigmoid(g[0 * H:1 * H])
        f_g = sigmoid(g[1 * H:2 * H])
        g_g = np.tanh(g[2 * H:3 * H])
        o_g = sigmoid(g[3 * H:4 * H])
        c = f_g * c + i_g * g_g
        h = o_g * np.tanh(c)
        out = h
        if len(picks) < subset:
            s = scores(out, len(picks), i + 1)
            choice = int(np.argmax(s))
            picks.append(choice)
            loss -= np.log(s[choice]) / (n - i)
    return loss, np.stack(outputs), picks


if __name__ == "__main__":
    # Small shapes consistent with the module: seq n=8, input_dim=hidden_dim=32
    # (default similarity requires input_dim == hidden_dim), subset=3 <= n.
    n, input_dim, hidden_dim, subset = 8, 32, 32, 3

    key = jax.random.PRNGKey(0)
    inputs = jax.random.normal(key, (n, input_dim), dtype=jnp.float32)

    model = SRNNPallas(input_dim, hidden_dim, subset=subset, seed=0)
    loss, outputs, picks = model.forward(inputs)

    jax.block_until_ready(loss)
    jax.block_until_ready(jnp.stack(outputs))
    assert len(outputs) == n and len(picks) == subset

    # Cross-check against a pure-numpy port of the reference module.
    ref_loss, ref_outputs, ref_picks = reference_forward(
        inputs, model.W_ih_T, model.W_hh_T, model.b, subset)
    assert picks == ref_picks, (picks, ref_picks)
    np.testing.assert_allclose(float(loss), float(ref_loss), rtol=5e-2, atol=5e-2)
    np.testing.assert_allclose(np.asarray(jnp.stack(outputs))[:, 0, :],
                               ref_outputs, rtol=5e-2, atol=5e-2)

    print("KERNEL_OK")
</pallas_src>

<mosaic_0001>
module attributes {stable_mosaic.version = 11 : i64} {
  func.func @kernel(%arg0: memref<8x32xf32, #tpu.memory_space<vmem>>, %arg1: memref<32x8xf32, #tpu.memory_space<vmem>>, %arg2: memref<32x128xf32, #tpu.memory_space<vmem>>, %arg3: memref<32x128xf32, #tpu.memory_space<vmem>>, %arg4: memref<1x128xf32, #tpu.memory_space<vmem>>, %arg5: memref<27x1x8xf32, #tpu.memory_space<vmem>>, %arg6: memref<1x32xf32, #tpu.memory_space<vmem>>, %arg7: memref<1x32xf32, #tpu.memory_space<vmem>>, %arg8: memref<8x1x32xf32, #tpu.memory_space<vmem>>, %arg9: memref<1x32xf32, #tpu.memory_space<vmem>>, %arg10: memref<1x32xf32, #tpu.memory_space<vmem>>, %arg11: memref<1x1xf32, #tpu.memory_space<vmem>>, %arg12: memref<3xi32, #tpu.memory_space<smem>>, %arg13: memref<8x1x128xf32, #tpu.memory_space<vmem>>, %arg14: memref<2xi32, #tpu.memory_space<smem>>) attributes {dimension_semantics = [], scalar_prefetch = 0 : i64, scratch_operands = 2 : i64, tpu.core_type = #tpu.core_type<tc>} {
    %c0 = arith.constant 0 : index
    %c0_0 = arith.constant 0 : index
    %0 = vector.load %arg6[%c0, %c0_0] : memref<1x32xf32, #tpu.memory_space<vmem>>, vector<1x32xf32>
    %c0_1 = arith.constant 0 : index
    %c0_2 = arith.constant 0 : index
    %1 = vector.load %arg9[%c0_1, %c0_2] : memref<1x32xf32, #tpu.memory_space<vmem>>, vector<1x32xf32>
    tpu.vector_store %arg9[%c0_1, %c0_2], %0 {strides = array<i32>} : memref<1x32xf32, #tpu.memory_space<vmem>>, vector<1x32xf32>,
    %c0_3 = arith.constant 0 : index
    %c0_4 = arith.constant 0 : index
    %2 = vector.load %arg7[%c0_3, %c0_4] : memref<1x32xf32, #tpu.memory_space<vmem>>, vector<1x32xf32>
    %c0_5 = arith.constant 0 : index
    %c0_6 = arith.constant 0 : index
    %3 = vector.load %arg10[%c0_5, %c0_6] : memref<1x32xf32, #tpu.memory_space<vmem>>, vector<1x32xf32>
    tpu.vector_store %arg10[%c0_5, %c0_6], %2 {strides = array<i32>} : memref<1x32xf32, #tpu.memory_space<vmem>>, vector<1x32xf32>,
    %c0_7 = arith.constant 0 : index
    %c0_8 = arith.constant 0 : index
    %4 = vector.load %arg0[%c0_7, %c0_8] : memref<8x32xf32, #tpu.memory_space<vmem>>, vector<8x32xf32>
    %c0_9 = arith.constant 0 : index
    %c0_10 = arith.constant 0 : index
    %5 = vector.load %arg2[%c0_9, %c0_10] : memref<32x128xf32, #tpu.memory_space<vmem>>, vector<32x128xf32>
    %cst = arith.constant dense<0.000000e+00> : vector<8x128xf32>
    %6 = tpu.matmul %4, %5, %cst {dimension_numbers = #tpu.dot_dimension_numbers<[1], [0], [0], [1], [0, 0, 1, 1], [], []>} : vector<8x32xf32>, vector<32x128xf32>, vector<8x128xf32> -> vector<8x128xf32>
    %c0_11 = arith.constant 0 : index
    %c0_12 = arith.constant 0 : index
    %7 = vector.load %arg4[%c0_11, %c0_12] : memref<1x128xf32, #tpu.memory_space<vmem>>, vector<1x128xf32>
    %8 = vector.broadcast %7 : vector<1x128xf32> to vector<8x128xf32>
    %9 = arith.addf %6, %8 : vector<8x128xf32>
    %10 = vector.extract_strided_slice %9 {offsets = [0, 0], sizes = [1, 128], strides = [1, 1]} : vector<8x128xf32> to vector<1x128xf32>
    %c0_13 = arith.constant 0 : index
    %c0_14 = arith.constant 0 : index
    %c0_15 = arith.constant 0 : index
    %11 = vector.load %arg13[%c0_13, %c0_14, %c0_15] : memref<8x1x128xf32, #tpu.memory_space<vmem>>, vector<1x1x128xf32>
    %12 = vector.shape_cast %11 : vector<1x1x128xf32> to vector<1x128xf32>
    %13 = vector.shape_cast %10 : vector<1x128xf32> to vector<1x1x128xf32>
    tpu.vector_store %arg13[%c0_13, %c0_14, %c0_15], %13 {strides = array<i32>} : memref<8x1x128xf32, #tpu.memory_space<vmem>>, vector<1x1x128xf32>,
    %14 = vector.extract_strided_slice %9 {offsets = [1, 0], sizes = [1, 128], strides = [1, 1]} : vector<8x128xf32> to vector<1x128xf32>
    %c1 = arith.constant 1 : index
    %c0_16 = arith.constant 0 : index
    %c0_17 = arith.constant 0 : index
    %15 = vector.load %arg13[%c1, %c0_16, %c0_17] : memref<8x1x128xf32, #tpu.memory_space<vmem>>, vector<1x1x128xf32>
    %16 = vector.shape_cast %15 : vector<1x1x128xf32> to vector<1x128xf32>
    %17 = vector.shape_cast %14 : vector<1x128xf32> to vector<1x1x128xf32>
    tpu.vector_store %arg13[%c1, %c0_16, %c0_17], %17 {strides = array<i32>} : memref<8x1x128xf32, #tpu.memory_space<vmem>>, vector<1x1x128xf32>,
    %18 = vector.extract_strided_slice %9 {offsets = [2, 0], sizes = [1, 128], strides = [1, 1]} : vector<8x128xf32> to vector<1x128xf32>
    %c2 = arith.constant 2 : index
    %c0_18 = arith.constant 0 : index
    %c0_19 = arith.constant 0 : index
    %19 = vector.load %arg13[%c2, %c0_18, %c0_19] : memref<8x1x128xf32, #tpu.memory_space<vmem>>, vector<1x1x128xf32>
    %20 = vector.shape_cast %19 : vector<1x1x128xf32> to vector<1x128xf32>
    %21 = vector.shape_cast %18 : vector<1x128xf32> to vector<1x1x128xf32>
    tpu.vector_store %arg13[%c2, %c0_18, %c0_19], %21 {strides = array<i32>} : memref<8x1x128xf32, #tpu.memory_space<vmem>>, vector<1x1x128xf32>,
    %22 = vector.extract_strided_slice %9 {offsets = [3, 0], sizes = [1, 128], strides = [1, 1]} : vector<8x128xf32> to vector<1x128xf32>
    %c3 = arith.constant 3 : index
    %c0_20 = arith.constant 0 : index
    %c0_21 = arith.constant 0 : index
    %23 = vector.load %arg13[%c3, %c0_20, %c0_21] : memref<8x1x128xf32, #tpu.memory_space<vmem>>, vector<1x1x128xf32>
    %24 = vector.shape_cast %23 : vector<1x1x128xf32> to vector<1x128xf32>
    %25 = vector.shape_cast %22 : vector<1x128xf32> to vector<1x1x128xf32>
    tpu.vector_store %arg13[%c3, %c0_20, %c0_21], %25 {strides = array<i32>} : memref<8x1x128xf32, #tpu.memory_space<vmem>>, vector<1x1x128xf32>,
    %26 = vector.extract_strided_slice %9 {offsets = [4, 0], sizes = [1, 128], strides = [1, 1]} : vector<8x128xf32> to vector<1x128xf32>
    %c4 = arith.constant 4 : index
    %c0_22 = arith.constant 0 : index
    %c0_23 = arith.constant 0 : index
    %27 = vector.load %arg13[%c4, %c0_22, %c0_23] : memref<8x1x128xf32, #tpu.memory_space<vmem>>, vector<1x1x128xf32>
    %28 = vector.shape_cast %27 : vector<1x1x128xf32> to vector<1x128xf32>
    %29 = vector.shape_cast %26 : vector<1x128xf32> to vector<1x1x128xf32>
    tpu.vector_store %arg13[%c4, %c0_22, %c0_23], %29 {strides = array<i32>} : memref<8x1x128xf32, #tpu.memory_space<vmem>>, vector<1x1x128xf32>,
    %30 = vector.extract_strided_slice %9 {offsets = [5, 0], sizes = [1, 128], strides = [1, 1]} : vector<8x128xf32> to vector<1x128xf32>
    %c5 = arith.constant 5 : index
    %c0_24 = arith.constant 0 : index
    %c0_25 = arith.constant 0 : index
    %31 = vector.load %arg13[%c5, %c0_24, %c0_25] : memref<8x1x128xf32, #tpu.memory_space<vmem>>, vector<1x1x128xf32>
    %32 = vector.shape_cast %31 : vector<1x1x128xf32> to vector<1x128xf32>
    %33 = vector.shape_cast %30 : vector<1x128xf32> to vector<1x1x128xf32>
    tpu.vector_store %arg13[%c5, %c0_24, %c0_25], %33 {strides = array<i32>} : memref<8x1x128xf32, #tpu.memory_space<vmem>>, vector<1x1x128xf32>,
    %34 = vector.extract_strided_slice %9 {offsets = [6, 0], sizes = [1, 128], strides = [1, 1]} : vector<8x128xf32> to vector<1x128xf32>
    %c6 = arith.constant 6 : index
    %c0_26 = arith.constant 0 : index
    %c0_27 = arith.constant 0 : index
    %35 = vector.load %arg13[%c6, %c0_26, %c0_27] : memref<8x1x128xf32, #tpu.memory_space<vmem>>, vector<1x1x128xf32>
    %36 = vector.shape_cast %35 : vector<1x1x128xf32> to vector<1x128xf32>
    %37 = vector.shape_cast %34 : vector<1x128xf32> to vector<1x1x128xf32>
    tpu.vector_store %arg13[%c6, %c0_26, %c0_27], %37 {strides = array<i32>} : memref<8x1x128xf32, #tpu.memory_space<vmem>>, vector<1x1x128xf32>,
    %38 = vector.extract_strided_slice %9 {offsets = [7, 0], sizes = [1, 128], strides = [1, 1]} : vector<8x128xf32> to vector<1x128xf32>
    %c7 = arith.constant 7 : index
    %c0_28 = arith.constant 0 : index
    %c0_29 = arith.constant 0 : index
    %39 = vector.load %arg13[%c7, %c0_28, %c0_29] : memref<8x1x128xf32, #tpu.memory_space<vmem>>, vector<1x1x128xf32>
    %40 = vector.shape_cast %39 : vector<1x1x128xf32> to vector<1x128xf32>
    %41 = vector.shape_cast %38 : vector<1x128xf32> to vector<1x1x128xf32>
    tpu.vector_store %arg13[%c7, %c0_28, %c0_29], %41 {strides = array<i32>} : memref<8x1x128xf32, #tpu.memory_space<vmem>>, vector<1x1x128xf32>,
    %c0_i32 = arith.constant 0 : i32
    %c0_30 = arith.constant 0 : index
    %42 = memref.load %arg12[%c0_30] : memref<3xi32, #tpu.memory_space<smem>>
    memref.store %c0_i32, %arg12[%c0_30] : memref<3xi32, #tpu.memory_space<smem>>
    %c0_i32_31 = arith.constant 0 : i32
    %c1_32 = arith.constant 1 : index
    %43 = memref.load %arg12[%c1_32] : memref<3xi32, #tpu.memory_space<smem>>
    memref.store %c0_i32_31, %arg12[%c1_32] : memref<3xi32, #tpu.memory_space<smem>>
    %c0_i32_33 = arith.constant 0 : i32
    %c2_34 = arith.constant 2 : index
    %44 = memref.load %arg12[%c2_34] : memref<3xi32, #tpu.memory_space<smem>>
    memref.store %c0_i32_33, %arg12[%c2_34] : memref<3xi32, #tpu.memory_space<smem>>
    %c0_35 = arith.constant 0 : index
    %c0_36 = arith.constant 0 : index
    %45 = vector.load %arg9[%c0_35, %c0_36] : memref<1x32xf32, #tpu.memory_space<vmem>>, vector<1x32xf32>
    %c0_37 = arith.constant 0 : index
    %c0_38 = arith.constant 0 : index
    %46 = vector.load %arg1[%c0_37, %c0_38] : memref<32x8xf32, #tpu.memory_space<vmem>>, vector<32x8xf32>
    %cst_39 = arith.constant dense<0.000000e+00> : vector<1x8xf32>
    %47 = tpu.matmul %45, %46, %cst_39 {dimension_numbers = #tpu.dot_dimension_numbers<[1], [0], [0], [1], [0, 0, 1, 1], [], []>} : vector<1x32xf32>, vector<32x8xf32>, vector<1x8xf32> -> vector<1x8xf32>
    %cst_40 = arith.constant dense<0xFF800000> : vector<1xf32>
    %48 = vector.multi_reduction <maximumf>, %47, %cst_40 [1] : vector<1x8xf32> to vector<1xf32>
    %49 = vector.shape_cast %48 : vector<1xf32> to vector<1x1xf32>
    %50 = vector.broadcast %49 : vector<1x1xf32> to vector<1x8xf32>
    %51 = arith.subf %47, %50 : vector<1x8xf32>
    %52 = math.exp %51 : vector<1x8xf32>
    %c0_41 = arith.constant 0 : index
    %c0_42 = arith.constant 0 : index
    %c0_43 = arith.constant 0 : index
    %53 = vector.load %arg5[%c0_41, %c0_42, %c0_43] : memref<27x1x8xf32, #tpu.memory_space<vmem>>, vector<1x1x8xf32>
    %54 = vector.shape_cast %53 : vector<1x1x8xf32> to vector<1x8xf32>
    %55 = arith.mulf %52, %54 : vector<1x8xf32>
    %cst_44 = arith.constant dense<0.000000e+00> : vector<1xf32>
    %56 = vector.multi_reduction <add>, %55, %cst_44 [1] : vector<1x8xf32> to vector<1xf32>
    %57 = vector.shape_cast %56 : vector<1xf32> to vector<1x1xf32>
    %58 = tpu.reciprocal %57 {approx = true} : vector<1x1xf32> -> vector<1x1xf32>
    %59 = vector.broadcast %58 : vector<1x1xf32> to vector<1x8xf32>
    %60 = arith.mulf %55, %59 : vector<1x8xf32>
    %cst_45 = arith.constant dense<0xFF800000> : vector<1xf32>
    %61 = vector.multi_reduction <maximumf>, %60, %cst_45 [1] : vector<1x8xf32> to vector<1xf32>
    %62 = vector.shape_cast %61 : vector<1xf32> to vector<1x1xf32>
    %63 = tpu.iota {dimensions = array<i32: 1>} : vector<1x8xi32>
    %64 = arith.sitofp %63 : vector<1x8xi32> to vector<1x8xf32>
    %65 = vector.broadcast %62 : vector<1x1xf32> to vector<1x8xf32>
    %66 = arith.cmpf oeq, %60, %65 : vector<1x8xf32>
    %cst_46 = arith.constant 8.000000e+00 : f32
    %67 = vector.broadcast %cst_46 : f32 to vector<1x8xf32>
    %68 = arith.select %66, %64, %67 : vector<1x8xi1>, vector<1x8xf32>
    %69 = vector.shape_cast %68 : vector<1x8xf32> to vector<1x1x8xf32>
    %cst_47 = arith.constant dense<0x7F800000> : vector<1xf32>
    %70 = vector.multi_reduction <minimumf>, %69, %cst_47 [1, 2] : vector<1x1x8xf32> to vector<1xf32>
    %71 = vector.shape_cast %70 : vector<1xf32> to vector<1x1x1xf32>
    %72 = vector.extract %71[0, 0, 0] : f32 from vector<1x1x1xf32>
    %73 = arith.fptosi %72 : f32 to i32
    %c0_48 = arith.constant 0 : index
    %74 = memref.load %arg12[%c0_48] : memref<3xi32, #tpu.memory_space<smem>>
    memref.store %73, %arg12[%c0_48] : memref<3xi32, #tpu.memory_space<smem>>
    %c0_49 = arith.constant 0 : index
    %75 = memref.load %arg14[%c0_49] : memref<2xi32, #tpu.memory_space<smem>>
    memref.store %73, %arg14[%c0_49] : memref<2xi32, #tpu.memory_space<smem>>
    %c1_i32 = arith.constant 1 : i32
    %c1_50 = arith.constant 1 : index
    %76 = memref.load %arg14[%c1_50] : memref<2xi32, #tpu.memory_space<smem>>
    memref.store %c1_i32, %arg14[%c1_50] : memref<2xi32, #tpu.memory_space<smem>>
    %77 = math.log %62 : vector<1x1xf32>
    %cst_51 = arith.constant 0.000000e+00 : f32
    %78 = vector.broadcast %cst_51 : f32 to vector<1x1xf32>
    %79 = arith.subf %78, %77 : vector<1x1xf32>
    %cst_52 = arith.constant 8.000000e+00 : f32
    %80 = vector.broadcast %cst_52 : f32 to vector<1x1xf32>
    %81 = arith.divf %79, %80 : vector<1x1xf32>
    %c0_53 = arith.constant 0 : index
    %c0_54 = arith.constant 0 : index
    %82 = vector.load %arg11[%c0_53, %c0_54] : memref<1x1xf32, #tpu.memory_space<vmem>>, vector<1x1xf32>
    tpu.vector_store %arg11[%c0_53, %c0_54], %81 {strides = array<i32>} : memref<1x1xf32, #tpu.memory_space<vmem>>, vector<1x1xf32>,
    %c0_i32_55 = arith.constant 0 : i32
    %c8_i32 = arith.constant 8 : i32
    %83 = arith.addi %c0_i32_55, %c8_i32 : i32
    %c1_i32_56 = arith.constant 1 : i32
    scf.for %arg15 = %c0_i32_55 to %83 step %c1_i32_56  : i32 {
      %c0_58 = arith.constant 0 : index
      %c0_59 = arith.constant 0 : index
      %84 = vector.load %arg9[%c0_58, %c0_59] : memref<1x32xf32, #tpu.memory_space<vmem>>, vector<1x32xf32>
      %85 = arith.index_cast %arg15 : i32 to index
      %c0_60 = arith.constant 0 : index
      %c0_61 = arith.constant 0 : index
      %86 = vector.load %arg8[%85, %c0_60, %c0_61] : memref<8x1x32xf32, #tpu.memory_space<vmem>>, vector<1x1x32xf32>
      %87 = vector.shape_cast %86 : vector<1x1x32xf32> to vector<1x32xf32>
      %88 = vector.shape_cast %84 : vector<1x32xf32> to vector<1x1x32xf32>
      tpu.vector_store %arg8[%85, %c0_60, %c0_61], %88 {strides = array<i32>} : memref<8x1x32xf32, #tpu.memory_space<vmem>>, vector<1x1x32xf32>,
      %c0_62 = arith.constant 0 : index
      %89 = memref.load %arg14[%c0_62] : memref<2xi32, #tpu.memory_space<smem>>
      %90 = arith.cmpi sle, %89, %arg15 : i32
      %91 = arith.extui %90 : i1 to i32
      %c0_i32_63 = arith.constant 0 : i32
      %92 = arith.cmpi ne, %91, %c0_i32_63 : i32
      scf.if %92 {
        %c0_64 = arith.constant 0 : index
        %c0_65 = arith.constant 0 : index
        %93 = vector.load %arg9[%c0_64, %c0_65] : memref<1x32xf32, #tpu.memory_space<vmem>>, vector<1x32xf32>
        %c0_66 = arith.constant 0 : index
        %c0_67 = arith.constant 0 : index
        %94 = vector.load %arg10[%c0_66, %c0_67] : memref<1x32xf32, #tpu.memory_space<vmem>>, vector<1x32xf32>
        %95 = arith.index_cast %arg15 : i32 to index
        %c0_68 = arith.constant 0 : index
        %c0_69 = arith.constant 0 : index
        %96 = vector.load %arg13[%95, %c0_68, %c0_69] : memref<8x1x128xf32, #tpu.memory_space<vmem>>, vector<1x1x128xf32>
        %97 = vector.shape_cast %96 : vector<1x1x128xf32> to vector<1x128xf32>
        %c0_70 = arith.constant 0 : index
        %c0_71 = arith.constant 0 : index
        %98 = vector.load %arg3[%c0_70, %c0_71] : memref<32x128xf32, #tpu.memory_space<vmem>>, vector<32x128xf32>
        %cst_72 = arith.constant dense<0.000000e+00> : vector<1x128xf32>
        %99 = tpu.matmul %93, %98, %cst_72 {dimension_numbers = #tpu.dot_dimension_numbers<[1], [0], [0], [1], [0, 0, 1, 1], [], []>} : vector<1x32xf32>, vector<32x128xf32>, vector<1x128xf32> -> vector<1x128xf32>
        %100 = arith.addf %97, %99 : vector<1x128xf32>
        %101 = vector.extract_strided_slice %100 {offsets = [0, 0], sizes = [1, 32], strides = [1, 1]} : vector<1x128xf32> to vector<1x32xf32>
        %102 = arith.negf %101 : vector<1x32xf32>
        %103 = math.exp %102 : vector<1x32xf32>
        %cst_73 = arith.constant 1.000000e+00 : f32
        %104 = vector.broadcast %cst_73 : f32 to vector<1x32xf32>
        %105 = arith.addf %104, %103 : vector<1x32xf32>
        %106 = arith.divf %104, %105 : vector<1x32xf32>
        %107 = vector.extract_strided_slice %100 {offsets = [0, 32], sizes = [1, 32], strides = [1, 1]} : vector<1x128xf32> to vector<1x32xf32>
        %108 = arith.negf %107 : vector<1x32xf32>
        %109 = math.exp %108 : vector<1x32xf32>
        %cst_74 = arith.constant 1.000000e+00 : f32
        %110 = vector.broadcast %cst_74 : f32 to vector<1x32xf32>
        %111 = arith.addf %110, %109 : vector<1x32xf32>
        %112 = arith.divf %110, %111 : vector<1x32xf32>
        %113 = vector.extract_strided_slice %100 {offsets = [0, 64], sizes = [1, 32], strides = [1, 1]} : vector<1x128xf32> to vector<1x32xf32>
        %114 = math.tanh %113 : vector<1x32xf32>
        %115 = vector.extract_strided_slice %100 {offsets = [0, 96], sizes = [1, 32], strides = [1, 1]} : vector<1x128xf32> to vector<1x32xf32>
        %116 = arith.negf %115 : vector<1x32xf32>
        %117 = math.exp %116 : vector<1x32xf32>
        %cst_75 = arith.constant 1.000000e+00 : f32
        %118 = vector.broadcast %cst_75 : f32 to vector<1x32xf32>
        %119 = arith.addf %118, %117 : vector<1x32xf32>
        %120 = arith.divf %118, %119 : vector<1x32xf32>
        %121 = arith.mulf %112, %94 : vector<1x32xf32>
        %122 = arith.mulf %106, %114 : vector<1x32xf32>
        %123 = arith.addf %121, %122 : vector<1x32xf32>
        %124 = math.tanh %123 : vector<1x32xf32>
        %125 = arith.mulf %120, %124 : vector<1x32xf32>
        %c0_76 = arith.constant 0 : index
        %c0_77 = arith.constant 0 : index
        %126 = vector.load %arg10[%c0_76, %c0_77] : memref<1x32xf32, #tpu.memory_space<vmem>>, vector<1x32xf32>
        tpu.vector_store %arg10[%c0_76, %c0_77], %123 {strides = array<i32>} : memref<1x32xf32, #tpu.memory_space<vmem>>, vector<1x32xf32>,
        %c0_78 = arith.constant 0 : index
        %c0_79 = arith.constant 0 : index
        %127 = vector.load %arg9[%c0_78, %c0_79] : memref<1x32xf32, #tpu.memory_space<vmem>>, vector<1x32xf32>
        tpu.vector_store %arg9[%c0_78, %c0_79], %125 {strides = array<i32>} : memref<1x32xf32, #tpu.memory_space<vmem>>, vector<1x32xf32>,
        %c1_80 = arith.constant 1 : index
        %128 = memref.load %arg14[%c1_80] : memref<2xi32, #tpu.memory_space<smem>>
        %c3_i32 = arith.constant 3 : i32
        %129 = arith.cmpi slt, %128, %c3_i32 : i32
        %130 = arith.extui %129 : i1 to i32
        %c0_i32_81 = arith.constant 0 : i32
        %131 = arith.cmpi ne, %130, %c0_i32_81 : i32
        scf.if %131 {
          %c9_i32 = arith.constant 9 : i32
          %132 = arith.muli %128, %c9_i32 : i32
          %c1_i32_82 = arith.constant 1 : i32
          %133 = arith.addi %arg15, %c1_i32_82 : i32
          %134 = arith.addi %132, %133 : i32
          %c0_83 = arith.constant 0 : index
          %c0_84 = arith.constant 0 : index
          %135 = vector.load %arg1[%c0_83, %c0_84] : memref<32x8xf32, #tpu.memory_space<vmem>>, vector<32x8xf32>
          %cst_85 = arith.constant dense<0.000000e+00> : vector<1x8xf32>
          %136 = tpu.matmul %125, %135, %cst_85 {dimension_numbers = #tpu.dot_dimension_numbers<[1], [0], [0], [1], [0, 0, 1, 1], [], []>} : vector<1x32xf32>, vector<32x8xf32>, vector<1x8xf32> -> vector<1x8xf32>
          %cst_86 = arith.constant dense<0xFF800000> : vector<1xf32>
          %137 = vector.multi_reduction <maximumf>, %136, %cst_86 [1] : vector<1x8xf32> to vector<1xf32>
          %138 = vector.shape_cast %137 : vector<1xf32> to vector<1x1xf32>
          %139 = vector.broadcast %138 : vector<1x1xf32> to vector<1x8xf32>
          %140 = arith.subf %136, %139 : vector<1x8xf32>
          %141 = math.exp %140 : vector<1x8xf32>
          %142 = arith.index_cast %134 : i32 to index
          %c0_87 = arith.constant 0 : index
          %c0_88 = arith.constant 0 : index
          %143 = vector.load %arg5[%142, %c0_87, %c0_88] : memref<27x1x8xf32, #tpu.memory_space<vmem>>, vector<1x1x8xf32>
          %144 = vector.shape_cast %143 : vector<1x1x8xf32> to vector<1x8xf32>
          %145 = arith.mulf %141, %144 : vector<1x8xf32>
          %cst_89 = arith.constant dense<0.000000e+00> : vector<1xf32>
          %146 = vector.multi_reduction <add>, %145, %cst_89 [1] : vector<1x8xf32> to vector<1xf32>
          %147 = vector.shape_cast %146 : vector<1xf32> to vector<1x1xf32>
          %148 = tpu.reciprocal %147 {approx = true} : vector<1x1xf32> -> vector<1x1xf32>
          %149 = vector.broadcast %148 : vector<1x1xf32> to vector<1x8xf32>
          %150 = arith.mulf %145, %149 : vector<1x8xf32>
          %cst_90 = arith.constant dense<0xFF800000> : vector<1xf32>
          %151 = vector.multi_reduction <maximumf>, %150, %cst_90 [1] : vector<1x8xf32> to vector<1xf32>
          %152 = vector.shape_cast %151 : vector<1xf32> to vector<1x1xf32>
          %153 = tpu.iota {dimensions = array<i32: 1>} : vector<1x8xi32>
          %154 = arith.sitofp %153 : vector<1x8xi32> to vector<1x8xf32>
          %155 = vector.broadcast %152 : vector<1x1xf32> to vector<1x8xf32>
          %156 = arith.cmpf oeq, %150, %155 : vector<1x8xf32>
          %cst_91 = arith.constant 8.000000e+00 : f32
          %157 = vector.broadcast %cst_91 : f32 to vector<1x8xf32>
          %158 = arith.select %156, %154, %157 : vector<1x8xi1>, vector<1x8xf32>
          %159 = vector.shape_cast %158 : vector<1x8xf32> to vector<1x1x8xf32>
          %cst_92 = arith.constant dense<0x7F800000> : vector<1xf32>
          %160 = vector.multi_reduction <minimumf>, %159, %cst_92 [1, 2] : vector<1x1x8xf32> to vector<1xf32>
          %161 = vector.shape_cast %160 : vector<1xf32> to vector<1x1x1xf32>
          %162 = vector.extract %161[0, 0, 0] : f32 from vector<1x1x1xf32>
          %163 = arith.fptosi %162 : f32 to i32
          %164 = arith.index_cast %128 : i32 to index
          %165 = memref.load %arg12[%164] : memref<3xi32, #tpu.memory_space<smem>>
          memref.store %163, %arg12[%164] : memref<3xi32, #tpu.memory_space<smem>>
          %c0_93 = arith.constant 0 : index
          %166 = memref.load %arg14[%c0_93] : memref<2xi32, #tpu.memory_space<smem>>
          memref.store %163, %arg14[%c0_93] : memref<2xi32, #tpu.memory_space<smem>>
          %c1_i32_94 = arith.constant 1 : i32
          %167 = arith.addi %128, %c1_i32_94 : i32
          %c1_95 = arith.constant 1 : index
          %168 = memref.load %arg14[%c1_95] : memref<2xi32, #tpu.memory_space<smem>>
          memref.store %167, %arg14[%c1_95] : memref<2xi32, #tpu.memory_space<smem>>
          %169 = arith.sitofp %arg15 : i32 to f32
          %cst_96 = arith.constant 8.000000e+00 : f32
          %170 = arith.subf %cst_96, %169 : f32
          %c0_97 = arith.constant 0 : index
          %c0_98 = arith.constant 0 : index
          %171 = vector.load %arg11[%c0_97, %c0_98] : memref<1x1xf32, #tpu.memory_space<vmem>>, vector<1x1xf32>
          %172 = math.log %152 : vector<1x1xf32>
          %173 = vector.broadcast %170 : f32 to vector<1x1xf32>
          %174 = arith.divf %172, %173 : vector<1x1xf32>
          %175 = arith.subf %171, %174 : vector<1x1xf32>
          %c0_99 = arith.constant 0 : index
          %c0_100 = arith.constant 0 : index
          %176 = vector.load %arg11[%c0_99, %c0_100] : memref<1x1xf32, #tpu.memory_space<vmem>>, vector<1x1xf32>
          tpu.vector_store %arg11[%c0_99, %c0_100], %175 {strides = array<i32>} : memref<1x1xf32, #tpu.memory_space<vmem>>, vector<1x1xf32>,
        } else {
        }
      } else {
      }
    }
    %c8_i32_57 = arith.constant 8 : i32
    return
  }
}

</mosaic_0001>

<bundles_post_ra>
// kernel: fwd.1
= control target key start
LH: loop header
LB: loop body
LE: loop exit
PB: predicated region body
PF: predicated region fallthrough
CT: control target
= control target key end

     0   :  { %18 = vsyncpa [#allocation5], 0  ;;  %s948_s0 = inlined_call_operand.vmem [shape: f32[8,32], index: 0, kind: input, shape index: {}]   ;;  %s949_s1 = inlined_call_operand.vmem [shape: f32[32,8], index: 1, kind: input, shape index: {}]   ;;  %s950_s2 = inlined_call_operand.vmem [shape: f32[32,128], index: 2, kind: input, shape index: {}]   ;;  %s951_s3 = inlined_call_operand.hbm [shape: f32[32,128], index: 3, kind: input, shape index: {}]   ;;  %s952_s4 = inlined_call_operand.vmem [shape: f32[1,128], index: 4, kind: input, shape index: {}]   ;;  %s953_s5 = inlined_call_operand.hbm [shape: f32[27,1,8], index: 5, kind: input, shape index: {}]   ;;  %s954_s6 = inlined_call_operand.vmem [shape: f32[1,32], index: 6, kind: input, shape index: {}]   ;;  %s955_s7 = inlined_call_operand.vmem [shape: f32[1,32], index: 7, kind: input, shape index: {}]   ;;  %s956_s8 = inlined_call_operand.hbm [shape: f32[8,1,32], index: 8, kind: output, shape index: {0}]   ;;  %s957_s9 = inlined_call_operand.hbm [shape: f32[1,32], index: 9, kind: output, shape index: {1}]   ;;  %s958_s10 = inlined_call_operand.hbm [shape: f32[1,32], index: 10, kind: output, shape index: {2}]   ;;  %s959_s11 = inlined_call_operand.hbm [shape: f32[1,1], index: 11, kind: output, shape index: {3}]   ;;  %s960_s12 = inlined_call_operand.hbm [shape: s32[3], index: 12, kind: output, shape index: {4}]  }
   0x1   :  { %19 = vsyncpa [#allocation9], 0 }
   0x2   :  { %20 = vsyncpa [#allocation6], 0 }
   0x3   :  { %21 = vsyncpa [#allocation12], 0 }
   0x4   :  { %22 = vsyncpa [#allocation15], 0 }
   0x5   :  { %23 = vsyncpa [#allocation7], 0  ;;  %s34_s23 = sshll.u32 %s951_s3, 4  ;;  %s741_s24 = smov [#allocation4]   ;;  %s35_s23 = int_to_ptr.hbm [resolvable:$true] %s34_s23 }
   0x6   :  { %s36_s25 = sshll.u32 %s741_s24, 4  ;;  %s49_s28 = sshll.u32 %s953_s5, 4  ;;  %s37_s25 = int_to_ptr.vmem [resolvable:$true] %s36_s25  ;;  %s50_s28 = int_to_ptr.hbm [resolvable:$true] %s49_s28 }
   0x7   :  { %s742_s29 = smov 128   ;;  %s743_s30 = smov 8  }
   0x8   :  { %42 = dma.hbm_to_vmem [thread:$0]  %s35_s23, 512, %s37_s25, [#allocation5], %s742_s29, %s742_s29, %s743_s30  }
   0x9   :  { %s744_s13 = smov [#allocation8]   ;;  %s745_s15 = smov 16  }
   0xa   :  { %s51_s14 = sshll.u32 %s744_s13, 4  ;;  %s746_s16 = smov 1   ;;  %s52_s14 = int_to_ptr.vmem [resolvable:$true] %s51_s14 }
   0xb   :  { %57 = dma.hbm_to_vmem [thread:$0]  %s50_s28, 432, %s52_s14, [#allocation9], %s745_s15, %s745_s15, %s746_s16  }
   0xc   :  { %725 = dma.done.wait [#allocation5], 512  }
   0xd   :  { %726 = vsyncadd [#allocation5], 4294966784 }
   0xe   :  { %727 = dma.done.wait [#allocation9], 432  }
   0xf   :  { %728 = vsyncadd [#allocation9], 4294966864  ;;  %194 = sst [smem:[#allocation3 + $0x1]] %s746_s16  ;;  %vm71_vm0 = vcmask 253952   ;;  %v133_v0 = vld [vmem:[%s949_s1 + $0x18] sm:$0xff]  ;;  %v132_v1 = vld [vmem:[%s949_s1 + $0x10] sm:$0xff]  ;;  %v174_v27 = vlaneseq }
  0x10   :  { %149 = vmatpush.msra.mxu1 %v133_v0  ;;  %v70_v2 = vld [vmem:[%s954_s6] sm:$0x1]  ;;  %v131_v4 = vld [vmem:[%s949_s1 + $0x8] sm:$0xff]  ;;  %vm84_vm1 = vcmask 261120   ;;  %vm157_vm2 = vcmask 57344   ;;  %v79_v20 = vld [vmem:[%s950_s2 + $0x18] sm:$0xff] }
  0x11   :  { %v73_v3 = vld [vmem:[%s955_s7] sm:$0x1]  ;;  %72 = vst.msk [vmem:[#allocation11] sm:$0x1] %vm71_vm0, %v70_v2  ;;  %v164_v12 = vld [vmem:[#allocation8] sm:$0x1]  ;;  %100 = vmatpush.msra.mxu0 %v79_v20 }
  0x12   :  { %150 = vmatpush.msra.mxu1 %v132_v1  ;;  %74 = vst.msk [vmem:[#allocation13] sm:$0x1] %vm71_vm0, %v73_v3  ;;  %v130_v5 = vld [vmem:[%s949_s1] sm:$0xff]  ;;  %v78_v21 = vld [vmem:[%s950_s2 + $0x10] sm:$0xff]  ;;  %v747_v22 = vmov 8.0   ;;  %v77_v23 = vld [vmem:[%s950_s2 + $0x8] sm:$0xff] }
  0x13   :  { %101 = vmatpush.msra.mxu0 %v78_v21  ;;  %v76_v24 = vld [vmem:[%s950_s2] sm:$0xff]  ;;  %v872_v29 = vand.u32 127, %v174_v27  ;;  %vm206_vm5 = vcmask 0   ;;  %s882_s22 = smov 0  }
  0x14   :  { %151 = vmatpush.msra.mxu1 %v131_v4  ;;  %v75_v25 = vld [vmem:[%s948_s0] sm:$0xff]  ;;  %s748_s0 = smov 0  }
  0x15   :  { %102 = vmatpush.msra.mxu0 %v77_v23  ;;  %v176_v31 = vcvt.s32.f32 %v872_v29  ;;  %126 = sst [smem:[#allocation16 + $0x1]] %s748_s0  ;;  %v540_v49 = vld [vmem:[%s952_s4] ss:$0 sm:$0xff] }
  0x16   :  { %152 = vmatpush.msra.mxu1 %v130_v5  ;;  %128 = sst [smem:[#allocation16 + $0x2]] %s748_s0 }
  0x17   :  { %103 = vmatpush.msra.mxu0 %v76_v24 }
  0x18   :  { %v129_v6 = vld [vmem:[#allocation11] sm:$0x1]  ;;  %493 = vmatmul.msk.f32.vlgmr.msra.gmra.mxu0 %vm84_vm1, %v75_v25 }
  0x19   :  { %494 = vmatmul.msk.f32.vlgmr.msra.gmra.mxu1 %vm84_vm1, %v129_v6 }
  0x95   :  { %v105_v50 = vpop.f32.mrf.mxu0 }
  0x96   :  { %v154_v7 = vpop.f32.mrf.mxu1  ;;  %v106_v51 = vadd.f32 %v540_v49, %v105_v50 }
  0x97   :  { %v158_v8 = vsel %vm157_vm2, %v154_v7, -inf }
  0x98   :  { %159 = vmax.xlane.f32.xlu0 %v158_v8  ;;  %108 = vst [vmem:[#allocation2] sm:$0x3] %v106_v51  }
  0x99   :  { %112 = vst [vmem:[#allocation2] sm:$0xc] %v106_v51  }
  0x9a   :  { %116 = vst [vmem:[#allocation2] sm:$0x30] %v106_v51  }
  0x9b   :  { %120 = vst [vmem:[#allocation2] sm:$0xc0] %v106_v51  }
 0x10b   :  { %v160_v9 = vpop.xlane.xlu0 %159 }
 0x10c   :  { %v161_v10 = vsub.f32 %v154_v7, %v160_v9 }
 0x10e   :  { %v162_v11 = vmul.f32 1.442695, %v161_v10 }
 0x110   :  { %541 = vpow2.f32 %v162_v11 }
 0x116   :  { %v542_v13 = vpop.eup %541 }
 0x117   :  { %v165_v14 = vmul.f32 %v542_v13, %v164_v12 }
 0x119   :  { %v166_v15 = vsel %vm157_vm2, %v165_v14, 0.0 }
 0x11a   :  { %167 = vadd.xlane.f32.xlu0 %v166_v15 }
 0x18d   :  { %v168_v16 = vpop.xlane.xlu0 %167 }
 0x18e   :  { %543 = vrcp.f32 %v168_v16 }
 0x18f   :  { %545 = vrcp.f32 %v747_v22 }
 0x194   :  { %v544_v17 = vpop.eup %543 }
 0x195   :  { %v170_v18 = vmul.f32 %v544_v17, %v165_v14  ;;  %v546_v26 = vpop.eup %545 }
 0x196   :  { %v199_v28 = vmul.f32 8.0, %v546_v26  ;;  %vm203_vm4 = vweird.f32 %v546_v26 }
 0x197   :  { %v171_v19 = vsel %vm157_vm2, %v170_v18, -inf }
 0x198   :  { %172 = vmax.xlane.f32.xlu1 %v171_v19  ;;  %v200_v30 = vsub.f32 1.0, %v199_v28 }
 0x19a   :  { %v201_v33 = vmul.f32 %v546_v26, %v200_v30 }
 0x19c   :  { %v202_v36 = vadd.f32 %v546_v26, %v201_v33 }
 0x19e   :  { %v204_v39 = vsel %vm203_vm4, %v546_v26, %v202_v36 }
 0x20b   :  { %v173_v32 = vpop.xlane.xlu1 %172 }
 0x20c   :  { %vm177_vm3 = vcmp.eq.f32.partialorder %v170_v18, %v173_v32  ;;  %547 = vlog2.f32 %v173_v32 }
 0x20d   :  { %v178_v34 = vsel %vm177_vm3, %v176_v31, 8.0 }
 0x20e   :  { %v179_v35 = vsel %vm157_vm2, %v178_v34, inf }
 0x20f   :  { %180 = vmin.xlane.f32.xlu1 %v179_v35 }
 0x212   :  { %v548_v37 = vpop.eup %547 }
 0x213   :  { %v196_v38 = vmul.f32 0.6931472, %v548_v37 }
 0x215   :  { %v197_v40 = vsub.f32 0.0, %v196_v38 }
 0x217   :  { %v205_v41 = vmul.f32 %v204_v39, %v197_v40 }
 0x219   :  { %207 = vst.msk [vmem:[#allocation14] sm:$0x1] %vm206_vm5, %v205_v41 }
 0x282   :  { %v181_v42 = vpop.xlane.xlu1 %180 }
 0x283   :  { %v182_v43 = vrot.slane %v181_v42, 4 }
 0x285   :  { %v183_v44 = vmin.f32 %v181_v42, %v182_v43 }
 0x287   :  { %v184_v45 = vrot.slane %v183_v44, 2 }
 0x289   :  { %v185_v46 = vmin.f32 %v183_v44, %v184_v45 }
 0x28b   :  { %v186_v47 = vrot.slane %v185_v46, 1 }
 0x28d   :  { %v187_v48 = vmin.f32 %v185_v46, %v186_v47 }
 0x28f   :  { %502 = vpush %v187_v48 }
 0x2c0   :  { %s503_s18 = spop %502 }
 0x2c1   :  { %p504_p0 = scmp.lt.s32.totalorder %s503_s18, 0  ;;  %s505_s19 = sceil.f32 %s503_s18 }
 0x2c2   :  { %s506_s20 = sfloor.f32 %s503_s18 }
 0x2c3   :  { %s962_s19 = smov (!%p504_p0, %s505_s19), %s506_s20 }
 0x2c4   :  { %s508_s21 = scvt.f32.s32 %s962_s19 }
 0x2c6   :  { %190 = sst [smem:[#allocation16]] %s508_s21 }
 0x2c7   :  { %192 = sst [smem:[#allocation3]] %s508_s21 }
 0x2c8 LB: > { %v214_v52 = vld [vmem:[#allocation11] sm:$0x1]  ;;  %s217_s4 = sld [smem:[#allocation3]]  ;;  %s215_s23 = scalar_lea.vmem [#allocation10], %s739_s22  ;;  %s739_s22 = sphi %s882_s22, %s213_s22  }
 0x2c9   : > { %216 = vst.msk [vmem:[%s215_s23] sm:$0x1] %vm71_vm0, %v214_v52 }
 0x2ce   : > { %p495_p1 = scmp.gt.s32.totalorder %s217_s4, %s739_s22 }
 0x2cf   : > { %s224_s24 = scalar_lea.vmem (!%p495_p1), [#allocation2], %s739_s22  ;;  %s749_s25 = smov (!%p495_p1), 64  }
 0x2d0   : > { %221 = sbr.rel (%p495_p1) target bundleno = 2015 (0x7df), region = 52  ;;  %s750_s26 = smov (!%p495_p1), 32  }
 0x2d1   : > { %s751_s6 = smov (!%p495_p1), 96   ;;  %s896_s7 = sld [smem:[#allocation3 + $0x1]] (!%p495_p1) }
 0x2d5   : > { %v229_v53 = vld [vmem:[#allocation4 + $0x18] sm:$0xff]  ;;  %v228_v54 = vld [vmem:[#allocation4 + $0x10] sm:$0xff]  ;;  %v227_v55 = vld [vmem:[#allocation4 + $0x8] sm:$0xff] }
 0x2d6   : > { %245 = vmatpush.msra.mxu0 %v229_v53  ;;  %v226_v56 = vld [vmem:[#allocation4] sm:$0xff]  ;;  %v225_v58 = vld [vmem:[%s224_s24] sm:$0x1] }
 0x2d7   : > { %v222_v57 = vld [vmem:[#allocation11] sm:$0x1]  ;;  %v223_v62 = vld [vmem:[#allocation13] sm:$0x1]  ;;  %p499_p2 = scmp.ge.s32.totalorder %s896_s7, 3 }
 0x2d8   : > { %246 = vmatpush.msra.mxu0 %v228_v54  ;;  %s483_s0 = smul.u32 (!%p499_p2), 9, %s896_s7  ;;  %s376_s18 = scvt.s32.f32 (!%p499_p2), %s739_s22 }
 0x2d9   : > { %s374_s20 = sadd.s32 (!%p499_p2), 1, %s896_s7 }
 0x2da   : > { %247 = vmatpush.msra.mxu0 %v227_v55  ;;  %s484_s2 = sadd.s32 (!%p499_p2), %s739_s22, %s483_s0  ;;  %s377_s19 = ssub.f32 (!%p499_p2), 8.0, %s376_s18 }
 0x2db   : > { %s485_s17 = scalar_lea.vmem (!%p499_p2), [#allocation8], %s484_s2  ;;  %375 = sst [smem:[#allocation3 + $0x1]] (!%p499_p2), %s374_s20 }
 0x2dc   : > { %248 = vmatpush.msra.mxu0 %v226_v56 }
 0x2dd   : > { %496 = vmatmul.msk.f32.vlgmr.msra.gmra.mxu0 %vm84_vm1, %v222_v57 }
 0x35a   : > { %v250_v59 = vpop.f32.mrf.mxu0 }
 0x35b   : > { %v253_v60 = vadd.f32 %v250_v59, %v225_v58 }
 0x35d   : > { %549 = vtanh.f32 %v253_v60  ;;  %v497_v63 = vmul.f32 -1.442695, %v253_v60 }
 0x35f   : > { %551 = vpow2.f32 %v497_v63 }
 0x363   : > { %v550_v61 = vpop.eup %549 }
 0x364   : > { %280 = vrot.lane.b32.xlu0 %v550_v61, %s749_s25 }
 0x365   : > { %v552_v0 = vpop.eup %551 }
 0x366   : > { %v257_v1 = vadd.f32 1.0, %v552_v0 }
 0x368   : > { %553 = vrcp.f32 %v257_v1  ;;  %v269_v7 = vand.u32 2147483648, %v257_v1  ;;  %vm263_vm7 = vweird.f32 %v257_v1  ;;  %v267_v8 = vand.u32 2147483647, %v257_v1 }
 0x36a   : > { %v270_v10 = vor.u32 1.1754944e-38, %v269_v7  ;;  %vm268_vm9 = vcmp.eq.f32.partialorder %v267_v8, 8.507059e+37 }
 0x36c   : > { %275 = vrot.lane.b32.xlu0 %v223_v62, %s750_s26 }
 0x36e   : > { %v554_v2 = vpop.eup %553 }
 0x36f   : > { %v259_v3 = vmul.f32 %v554_v2, %v257_v1  ;;  %vm264_vm6 = vweird.f32 %v554_v2 }
 0x370   : > { %vm265_vm8 = vmor %vm263_vm7, %vm264_vm6 }
 0x371   : > { %v260_v4 = vsub.f32 1.0, %v259_v3 }
 0x373   : > { %v261_v5 = vmul.f32 %v554_v2, %v260_v4 }
 0x375   : > { %v262_v6 = vadd.f32 %v554_v2, %v261_v5 }
 0x377   : > { %v266_v9 = vsel %vm265_vm8, %v554_v2, %v262_v6 }
 0x378   : > { %v271_v12 = vsel %vm268_vm9, %v270_v10, %v266_v9 }
 0x3d6   : > { %v281_v11 = vpop.permute.xlu0 %280 }
 0x3d7   : > { %v283_v13 = vmul.f32 %v281_v11, %v271_v12 }
 0x3d9   : > { %285 = vrot.lane.b32.xlu1 %v283_v13, %s750_s26 }
 0x3de   : > { %v276_v14 = vpop.permute.xlu0 %275 }
 0x3df   : > { %v278_v15 = vmul.f32 %v276_v14, %v271_v12 }
 0x44b   : > { %v286_v16 = vpop.permute.xlu1 %285 }
 0x44c   : > { %v288_v17 = vadd.f32 %v286_v16, %v278_v15 }
 0x44e   : > { %555 = vtanh.f32 %v288_v17  ;;  %v296_v18 = vperm.slane %v288_v17, 0 }
 0x450   : > { %297 = vrot.lane.b32.xlu2 %v296_v18, %s751_s6 }
 0x454   : > { %v556_v19 = vpop.eup %555 }
 0x455   : > { %291 = vrot.lane.b32.xlu1 %v556_v19, %s749_s25  ;;  %s371_s25 = scalar_lea.smem (!%p499_p2), [#allocation16], %s896_s7 }
 0x4aa   : > { %v298_v20 = vpop.permute.xlu2 %297 }
 0x4ab   : > { %300 = vst.msk [vmem:[#allocation13] sm:$0x1] %vm71_vm0, %v298_v20 }
 0x4c7   : > { %v292_v21 = vpop.permute.xlu1 %291 }
 0x4c8   : > { %v294_v22 = vmul.f32 %v292_v21, %v271_v12 }
 0x4ca   : > { %v302_v23 = vperm.slane %v294_v22, 0 }
 0x4cc   : > { %303 = vrot.lane.b32.xlu2 %v302_v23, %s750_s26 }
 0x523   : > { %311 = sbr.rel (%p499_p2) target bundleno = 2015 (0x7df), region = 56 }
 0x526   : > { %v304_v24 = vpop.permute.xlu2 %303 }
 0x527   : > { %306 = vst.msk [vmem:[#allocation11] sm:$0x1] %vm71_vm0, %v304_v24 }
 0x528   : > { %v318_v25 = vld [vmem:[%s949_s1 + $0x18] sm:$0xff]  ;;  %v317_v26 = vld [vmem:[%s949_s1 + $0x10] sm:$0xff]  ;;  %v316_v27 = vld [vmem:[%s949_s1 + $0x8] sm:$0xff]  ;;  %v381_v44 = vstv %s377_s19 }
 0x529   : > { %333 = vmatpush.msra.mxu0 %v318_v25  ;;  %v315_v28 = vld [vmem:[%s949_s1] sm:$0xff]  ;;  %vm387_vm10 = vweird.f32 %v381_v44  ;;  %v393_v49 = vand.u32 2147483648, %v381_v44  ;;  %v391_v51 = vand.u32 2147483647, %v381_v44  ;;  %v378_v60 = vld [vmem:[#allocation14] sm:$0x1] }
 0x52a   : > { %v501_v36 = vld [vmem:[%s485_s17 + $0x1] sm:$0x1] }
 0x52b   : > { %334 = vmatpush.msra.mxu0 %v317_v26  ;;  %v394_v54 = vor.u32 1.1754944e-38, %v393_v49  ;;  %vm392_vm14 = vcmp.eq.f32.partialorder %v391_v51, 8.507059e+37 }
 0x52d   : > { %335 = vmatpush.msra.mxu0 %v316_v27 }
 0x52f   : > { %336 = vmatpush.msra.mxu0 %v315_v28 }
 0x530   : > { %500 = vmatmul.msk.f32.vlgmr.msra.gmra.mxu0 %vm84_vm1, %v304_v24 }
 0x5ad   : > { %v338_v30 = vpop.f32.mrf.mxu0 }
 0x5ae   : > { %v341_v32 = vsel %vm157_vm2, %v338_v30, -inf }
 0x5af   : > { %342 = vmax.xlane.f32.xlu0 %v341_v32 }
 0x622   : > { %v343_v33 = vpop.xlane.xlu0 %342 }
 0x623   : > { %v344_v34 = vsub.f32 %v338_v30, %v343_v33 }
 0x625   : > { %v345_v35 = vmul.f32 1.442695, %v344_v34 }
 0x627   : > { %557 = vpow2.f32 %v345_v35 }
 0x62d   : > { %v558_v37 = vpop.eup %557 }
 0x62e   : > { %v349_v38 = vmul.f32 %v558_v37, %v501_v36 }
 0x630   : > { %v350_v39 = vsel %vm157_vm2, %v349_v38, 0.0 }
 0x631   : > { %351 = vadd.xlane.f32.xlu0 %v350_v39 }
 0x6a4   : > { %v352_v40 = vpop.xlane.xlu0 %351 }
 0x6a5   : > { %559 = vrcp.f32 %v352_v40 }
 0x6a6   : > { %561 = vrcp.f32 %v381_v44 }
 0x6ab   : > { %v560_v41 = vpop.eup %559 }
 0x6ac   : > { %v354_v42 = vmul.f32 %v560_v41, %v349_v38  ;;  %v562_v45 = vpop.eup %561 }
 0x6ad   : > { %v383_v46 = vmul.f32 %v562_v45, %v381_v44  ;;  %vm388_vm11 = vweird.f32 %v562_v45 }
 0x6ae   : > { %v355_v43 = vsel %vm157_vm2, %v354_v42, -inf  ;;  %vm389_vm12 = vmor %vm387_vm10, %vm388_vm11 }
 0x6af   : > { %356 = vmax.xlane.f32.xlu1 %v355_v43  ;;  %v384_v47 = vsub.f32 1.0, %v383_v46 }
 0x6b1   : > { %v385_v48 = vmul.f32 %v562_v45, %v384_v47 }
 0x6b3   : > { %v386_v50 = vadd.f32 %v562_v45, %v385_v48 }
 0x6b5   : > { %v390_v56 = vsel %vm389_vm12, %v562_v45, %v386_v50 }
 0x6b6   : > { %v395_v58 = vsel %vm392_vm14, %v394_v54, %v390_v56 }
 0x722   : > { %v357_v52 = vpop.xlane.xlu1 %356 }
 0x723   : > { %563 = vlog2.f32 %v357_v52  ;;  %vm358_vm13 = vcmp.eq.f32.partialorder %v354_v42, %v357_v52 }
 0x724   : > { %v359_v53 = vsel %vm358_vm13, %v176_v31, 8.0 }
 0x725   : > { %v360_v55 = vsel %vm157_vm2, %v359_v53, inf }
 0x726   : > { %361 = vmin.xlane.f32.xlu1 %v360_v55 }
 0x729   : > { %v564_v57 = vpop.eup %563 }
 0x72a   : > { %v380_v59 = vmul.f32 0.6931472, %v564_v57 }
 0x72c   : > { %v396_v61 = vmul.f32 %v395_v58, %v380_v59 }
 0x72e   : > { %v397_v62 = vsub.f32 %v378_v60, %v396_v61 }
 0x730   : > { %398 = vst.msk [vmem:[#allocation14] sm:$0x1] %vm206_vm5, %v397_v62 }
 0x799   : > { %v362_v63 = vpop.xlane.xlu1 %361 }
 0x79a   : > { %v363_v0 = vrot.slane %v362_v63, 4 }
 0x79c   : > { %v364_v1 = vmin.f32 %v362_v63, %v363_v0 }
 0x79e   : > { %v365_v2 = vrot.slane %v364_v1, 2 }
 0x7a0   : > { %v366_v3 = vmin.f32 %v364_v1, %v365_v2 }
 0x7a2   : > { %v367_v4 = vrot.slane %v366_v3, 1 }
 0x7a4   : > { %v368_v5 = vmin.f32 %v366_v3, %v367_v4 }
 0x7a6   : > { %509 = vpush %v368_v5 }
 0x7d7   : > { %s510_s21 = spop %509 }
 0x7d8   : > { %p511_p3 = scmp.lt.s32.totalorder %s510_s21, 0  ;;  %s512_s4 = sceil.f32 %s510_s21 }
 0x7d9   : > { %s513_s23 = sfloor.f32 %s510_s21 }
 0x7da   : > { %s964_s4 = smov (!%p511_p3, %s512_s4), %s513_s23 }
 0x7db   : > { %s515_s24 = scvt.f32.s32 %s964_s4 }
 0x7dd   : > { %372 = sst [smem:[%s371_s25]] %s515_s24 }
 0x7de   : > { %373 = sst [smem:[#allocation3]] %s515_s24 }
 0x7df PF: > { %s213_s22 = sadd.s32 1, %s739_s22  }
 0x7e0   : > { %p210_p4 = scmp.ge.s32.totalorder %s213_s22, 8  }
 0x7e1   :  { %s419_s27 = sshll.u32 (%p210_p4), %s957_s9, 4  ;;  %s752_s28 = smov (%p210_p4), [#allocation11]   ;;  %s420_s27 = int_to_ptr.hbm [resolvable:$true] %s419_s27 }
 0x7e2   :  { %212 = sbr.rel (!%p210_p4) target bundleno = 712 (0x2c8), region = 123  ;;  %s417_s29 = sshll.u32 (%p210_p4), %s752_s28, 4  ;;  %s418_s29 = int_to_ptr.vmem [resolvable:$true] %s417_s29 }
 0x7e3   :  { %422 = dma.vmem_to_hbm [thread:$0]  (%p210_p4), %s418_s29, 16, %s420_s27, [#allocation12]  }
 0x7e4   :  { %s753_s7 = smov (%p210_p4), [#allocation10]   ;;  %s405_s3 = sshll.u32 (%p210_p4), %s956_s8, 4  ;;  %s406_s3 = int_to_ptr.hbm [resolvable:$true] %s405_s3 }
 0x7e5   :  { %s403_s30 = sshll.u32 (%p210_p4), %s753_s7, 4  ;;  %s430_s9 = sshll.u32 (%p210_p4), %s958_s10, 4  ;;  %s404_s30 = int_to_ptr.vmem [resolvable:$true] %s403_s30  ;;  %s431_s9 = int_to_ptr.hbm [resolvable:$true] %s430_s9 }
 0x7e6   :  { %411 = dma.vmem_to_hbm [thread:$0]  (%p210_p4), %s404_s30, 128, %s406_s3, [#allocation6], %s745_s15, %s745_s15, %s746_s16  }
 0x7e7   :  { %s754_s5 = smov [#allocation13]   ;;  %s755_s2 = smov [#allocation14]  }
 0x7e8   :  { %s428_s0 = sshll.u32 %s754_s5, 4  ;;  %s439_s17 = sshll.u32 %s755_s2, 4  ;;  %s429_s0 = int_to_ptr.vmem [resolvable:$true] %s428_s0  ;;  %s440_s17 = int_to_ptr.vmem [resolvable:$true] %s439_s17 }
 0x7e9   :  { %433 = dma.vmem_to_hbm [thread:$0]  %s429_s0, 16, %s431_s9, [#allocation12]  }
 0x7ea   :  { %s441_s8 = sshll.u32 %s959_s11, 4  ;;  %s450_s16 = sshll.u32 %s960_s12, 4  ;;  %s442_s8 = int_to_ptr.hbm [resolvable:$true] %s441_s8  ;;  %s451_s16 = int_to_ptr.hbm [resolvable:$true] %s450_s16 }
 0x7eb   :  { %444 = dma.vmem_to_hbm [thread:$0]  %s440_s17, 16, %s442_s8, [#allocation15]  }
 0x7ec   :  { %s756_s10 = smov [#allocation16]  }
 0x7ed   :  { %453 = dma.smem_to_hbm %s756_s10, 16, %s451_s16, [#allocation7]  }
 0x7ee   :  { %729 = dma.done.wait [#allocation6], 128  }
 0x7ef   :  { %730 = vsyncadd [#allocation6], 4294967168 }
 0x7f0   :  { %731 = dma.done.wait [#allocation12], 32  }
 0x7f1   :  { %732 = vsyncadd [#allocation12], 4294967264 }
 0x7f2   :  { %733 = dma.done.wait [#allocation15], 16  }
 0x7f3   :  { %734 = vsyncadd [#allocation15], 4294967280 }
 0x7f4   :  { %735 = dma.done.wait [#allocation7], 16  }
 0x7f5   :  { %736 = vsyncadd [#allocation7], 4294967280 }
 0x7f6   :  { %474 = sfence }
 0x7f7   :  { %475 = vsyncpa [#allocation5], 1 }
 0x7f8   :  { %476 = vsyncpa [#allocation9], 1 }
 0x7f9   :  { %477 = vsyncpa [#allocation6], 1 }
 0x7fa   :  { %478 = vsyncpa [#allocation12], 1 }
 0x7fb   :  { %479 = vsyncpa [#allocation15], 1 }
 0x7fc   :  { %480 = vsyncpa [#allocation7], 1 }

</bundles_post_ra>
